<compile_context>
chip_gen: v7x
topology: tpu7x:2x2x1
jax: 0.10.0
libtpu: 0.0.40
codegen_flags: <defaults>
</compile_context>

<pallas_src>
import math

import jax
import jax.numpy as jnp
from jax import lax
from jax.experimental import pallas as pl
from jax.experimental.pallas import tpu as pltpu


def _build_embedding(num_steps: int, dim: float) -> jnp.ndarray:
    """Matches DiffusionEmbedding._build_embedding (dim = embedding_dim / 2)."""
    d = max(int(dim), 1)
    denom = max(d - 1, 1)  # guard the degenerate embedding_dim == 2 case
    steps = jnp.arange(num_steps, dtype=jnp.float32)[:, None]              # (num_steps, 1)
    freqs = 10.0 ** (jnp.arange(d, dtype=jnp.float32) / denom * 4.0)       # (d,)
    table = steps * freqs[None, :]                                         # (num_steps, d)
    return jnp.concatenate([jnp.sin(table), jnp.cos(table)], axis=1)       # (num_steps, 2*d)


def prepare_params(embedding_table, w1, b1, w2, b2):
    """One-time parameter prep (NOT in the per-call hot path).

    - Pads the embedding table rows to a multiple of 8 (sublane alignment).
    - Pre-transposes Linear weights to (in, out) so the kernel does x @ W.
    - Reshapes biases to (1, out) for lane-dense broadcast adds.
    """
    E = embedding_table.shape[1]
    P = w1.shape[0]
    S = embedding_table.shape[0]
    S_pad = ((S + 7) // 8) * 8
    table = embedding_table
    if S_pad != S:
        table = jnp.pad(table, ((0, S_pad - S), (0, 0)))
    return dict(
        table=table.astype(jnp.float32),          # (S_pad, E)
        w1_t=jnp.asarray(w1, jnp.float32).T,       # (E, P)
        b1=jnp.asarray(b1, jnp.float32).reshape(1, P),
        w2_t=jnp.asarray(w2, jnp.float32).T,       # (P, P)
        b2=jnp.asarray(b2, jnp.float32).reshape(1, P),
    )


def _diffusion_embedding_kernel(step_ref, table_ref, w1_ref, b1_ref, w2_ref, b2_ref, o_ref):
    # step: (B, 1) int32, table: (S, E), w1: (E, P), b1: (1, P), w2: (P, P), b2: (1, P)
    B = step_ref.shape[0]
    S = table_ref.shape[0]

    # In-kernel gather: one-hot (B, S) @ table (S, E) on the MXU.
    steps = step_ref[...]                                                   # (B, 1) int32
    iota = lax.broadcasted_iota(jnp.int32, (B, S), 1)                       # (B, S)
    onehot = (iota == steps).astype(jnp.float32)                            # (B, S)
    x = jnp.dot(onehot, table_ref[...],
                preferred_element_type=jnp.float32,
                precision=lax.Precision.HIGHEST)                            # (B, E)

    h = jnp.dot(x, w1_ref[...],
                preferred_element_type=jnp.float32,
                precision=lax.Precision.HIGHEST) + b1_ref[...]
    h = h * jax.nn.sigmoid(h)                                               # SiLU

    y = jnp.dot(h, w2_ref[...],
                preferred_element_type=jnp.float32,
                precision=lax.Precision.HIGHEST) + b2_ref[...]
    y = y * jax.nn.sigmoid(y)                                               # SiLU

    o_ref[...] = y.astype(o_ref.dtype)


@jax.jit
def diffusion_embedding_forward(diffusion_step, table, w1_t, b1, w2_t, b2):
    """Forward pass of DiffusionEmbedding (params already prepared via prepare_params).

    diffusion_step: int32 (B,)
    table: (S_pad, E) float32    w1_t: (E, P)   b1: (1, P)   w2_t: (P, P)   b2: (1, P)
    returns: (B, P) float32
    """
    B = diffusion_step.shape[0]
    P = w1_t.shape[1]
    steps_2d = diffusion_step.astype(jnp.int32).reshape(B, 1)

    vmem = pl.BlockSpec(memory_space=pltpu.MemorySpace.VMEM)
    return pl.pallas_call(
        _diffusion_embedding_kernel,
        out_shape=jax.ShapeDtypeStruct((B, P), jnp.float32),
        in_specs=[vmem, vmem, vmem, vmem, vmem, vmem],
        out_specs=vmem,
    )(steps_2d, table, w1_t, b1, w2_t, b2)


def reference_forward(diffusion_step, embedding_table, w1, b1, w2, b2):
    """Pure-JAX reference matching the PyTorch forward."""
    x = embedding_table[diffusion_step]
    x = jnp.dot(x, w1.T, precision=lax.Precision.HIGHEST) + b1
    x = jax.nn.silu(x)
    x = jnp.dot(x, w2.T, precision=lax.Precision.HIGHEST) + b2
    x = jax.nn.silu(x)
    return x


if __name__ == "__main__":
    # Module config (defaults from the PyTorch module).
    num_steps = 50
    embedding_dim = 128
    projection_dim = embedding_dim  # None -> embedding_dim
    batch = 8

    # Deterministic parameter init (synthetic, shapes from nn.Linear).
    key = jax.random.PRNGKey(0)
    k1, k2, k3, k4, k5 = jax.random.split(key, 5)
    bound1 = 1.0 / math.sqrt(embedding_dim)
    bound2 = 1.0 / math.sqrt(projection_dim)
    w1 = jax.random.uniform(k1, (projection_dim, embedding_dim),
                            minval=-bound1, maxval=bound1, dtype=jnp.float32)
    b1 = jax.random.uniform(k2, (projection_dim,),
                            minval=-bound1, maxval=bound1, dtype=jnp.float32)
    w2 = jax.random.uniform(k3, (projection_dim, projection_dim),
                            minval=-bound2, maxval=bound2, dtype=jnp.float32)
    b2 = jax.random.uniform(k4, (projection_dim,),
                            minval=-bound2, maxval=bound2, dtype=jnp.float32)

    embedding_table = _build_embedding(num_steps, embedding_dim / 2)        # (50, 128)
    diffusion_step = jax.random.randint(k5, (batch,), 0, num_steps, dtype=jnp.int32)

    # One-time parameter prep (transposes / padding / bias reshape).
    params = prepare_params(embedding_table, w1, b1, w2, b2)

    out = diffusion_embedding_forward(
        diffusion_step, params["table"], params["w1_t"], params["b1"],
        params["w2_t"], params["b2"])
    out = jax.block_until_ready(out)

    ref = reference_forward(diffusion_step, embedding_table, w1, b1, w2, b2)
    assert out.shape == (batch, projection_dim)
    assert jnp.allclose(out, ref, atol=1e-4, rtol=1e-4), "mismatch vs reference"

    print("KERNEL_OK")
</pallas_src>

<mosaic_0001>
module attributes {stable_mosaic.version = 11 : i64} {
  func.func @_diffusion_embedding_kernel(%arg0: memref<8x1xi32, #tpu.memory_space<vmem>>, %arg1: memref<56x128xf32, #tpu.memory_space<vmem>>, %arg2: memref<128x128xf32, #tpu.memory_space<vmem>>, %arg3: memref<1x128xf32, #tpu.memory_space<vmem>>, %arg4: memref<128x128xf32, #tpu.memory_space<vmem>>, %arg5: memref<1x128xf32, #tpu.memory_space<vmem>>, %arg6: memref<8x128xf32, #tpu.memory_space<vmem>>) attributes {dimension_semantics = [], scalar_prefetch = 0 : i64, scratch_operands = 0 : i64, tpu.core_type = #tpu.core_type<tc>} {
    %c0 = arith.constant 0 : index
    %c0_0 = arith.constant 0 : index
    %0 = vector.load %arg0[%c0, %c0_0] : memref<8x1xi32, #tpu.memory_space<vmem>>, vector<8x1xi32>
    %1 = tpu.iota {dimensions = array<i32: 1>} : vector<8x56xi32>
    %2 = vector.broadcast %0 : vector<8x1xi32> to vector<8x56xi32>
    %3 = arith.cmpi eq, %1, %2 : vector<8x56xi32>
    %4 = arith.extui %3 : vector<8x56xi1> to vector<8x56xi32>
    %5 = arith.sitofp %4 : vector<8x56xi32> to vector<8x56xf32>
    %c0_1 = arith.constant 0 : index
    %c0_2 = arith.constant 0 : index
    %6 = vector.load %arg1[%c0_1, %c0_2] : memref<56x128xf32, #tpu.memory_space<vmem>>, vector<56x128xf32>
    %cst = arith.constant dense<0.000000e+00> : vector<8x128xf32>
    %7 = tpu.matmul %5, %6, %cst {dimension_numbers = #tpu.dot_dimension_numbers<[1], [0], [0], [1], [0, 0, 1, 1], [], []>, precision = #tpu.contract_precision<fp32>} : vector<8x56xf32>, vector<56x128xf32>, vector<8x128xf32> -> vector<8x128xf32>
    %c0_3 = arith.constant 0 : index
    %c0_4 = arith.constant 0 : index
    %8 = vector.load %arg2[%c0_3, %c0_4] : memref<128x128xf32, #tpu.memory_space<vmem>>, vector<128x128xf32>
    %cst_5 = arith.constant dense<0.000000e+00> : vector<8x128xf32>
    %9 = tpu.matmul %7, %8, %cst_5 {dimension_numbers = #tpu.dot_dimension_numbers<[1], [0], [0], [1], [0, 0, 1, 1], [], []>, precision = #tpu.contract_precision<fp32>} : vector<8x128xf32>, vector<128x128xf32>, vector<8x128xf32> -> vector<8x128xf32>
    %c0_6 = arith.constant 0 : index
    %c0_7 = arith.constant 0 : index
    %10 = vector.load %arg3[%c0_6, %c0_7] : memref<1x128xf32, #tpu.memory_space<vmem>>, vector<1x128xf32>
    %11 = vector.broadcast %10 : vector<1x128xf32> to vector<8x128xf32>
    %12 = arith.addf %9, %11 : vector<8x128xf32>
    %13 = arith.negf %12 : vector<8x128xf32>
    %14 = math.exp %13 : vector<8x128xf32>
    %cst_8 = arith.constant 1.000000e+00 : f32
    %15 = vector.broadcast %cst_8 : f32 to vector<8x128xf32>
    %16 = arith.addf %15, %14 : vector<8x128xf32>
    %17 = arith.divf %15, %16 : vector<8x128xf32>
    %18 = arith.mulf %12, %17 : vector<8x128xf32>
    %c0_9 = arith.constant 0 : index
    %c0_10 = arith.constant 0 : index
    %19 = vector.load %arg4[%c0_9, %c0_10] : memref<128x128xf32, #tpu.memory_space<vmem>>, vector<128x128xf32>
    %cst_11 = arith.constant dense<0.000000e+00> : vector<8x128xf32>
    %20 = tpu.matmul %18, %19, %cst_11 {dimension_numbers = #tpu.dot_dimension_numbers<[1], [0], [0], [1], [0, 0, 1, 1], [], []>, precision = #tpu.contract_precision<fp32>} : vector<8x128xf32>, vector<128x128xf32>, vector<8x128xf32> -> vector<8x128xf32>
    %c0_12 = arith.constant 0 : index
    %c0_13 = arith.constant 0 : index
    %21 = vector.load %arg5[%c0_12, %c0_13] : memref<1x128xf32, #tpu.memory_space<vmem>>, vector<1x128xf32>
    %22 = vector.broadcast %21 : vector<1x128xf32> to vector<8x128xf32>
    %23 = arith.addf %20, %22 : vector<8x128xf32>
    %24 = arith.negf %23 : vector<8x128xf32>
    %25 = math.exp %24 : vector<8x128xf32>
    %cst_14 = arith.constant 1.000000e+00 : f32
    %26 = vector.broadcast %cst_14 : f32 to vector<8x128xf32>
    %27 = arith.addf %26, %25 : vector<8x128xf32>
    %28 = arith.divf %26, %27 : vector<8x128xf32>
    %29 = arith.mulf %23, %28 : vector<8x128xf32>
    %c0_15 = arith.constant 0 : index
    %c0_16 = arith.constant 0 : index
    %30 = vector.load %arg6[%c0_15, %c0_16] : memref<8x128xf32, #tpu.memory_space<vmem>>, vector<8x128xf32>
    tpu.vector_store %arg6[%c0_15, %c0_16], %29 {strides = array<i32>} : memref<8x128xf32, #tpu.memory_space<vmem>>, vector<8x128xf32>,
    return
  }
}

</mosaic_0001>

<bundles_post_ra>
// kernel: diffusion_embedding_forward.1
= control target key start
LH: loop header
LB: loop body
LE: loop exit
PB: predicated region body
PF: predicated region fallthrough
CT: control target
= control target key end

     0   :  { %11 = vsyncpa [#allocation3], 0  ;;  %s4033_s0 = inlined_call_operand.vmem [shape: s32[8,1], index: 0, kind: input, shape index: {}]   ;;  %s4034_s1 = inlined_call_operand.hbm [shape: f32[56,128], index: 1, kind: input, shape index: {}]   ;;  %s4035_s2 = inlined_call_operand.hbm [shape: f32[128,128], index: 2, kind: input, shape index: {}]   ;;  %s4036_s3 = inlined_call_operand.vmem [shape: f32[1,128], index: 3, kind: input, shape index: {}]   ;;  %s4037_s4 = inlined_call_operand.hbm [shape: f32[128,128], index: 4, kind: input, shape index: {}]   ;;  %s4038_s5 = inlined_call_operand.vmem [shape: f32[1,128], index: 5, kind: input, shape index: {}]   ;;  %s4039_s6 = inlined_call_operand.hbm [shape: f32[8,128], index: 6, kind: output, shape index: {}]  }
   0x1   :  { %12 = vsyncpa [#allocation6], 0 }
   0x2   :  { %13 = vsyncpa [#allocation4], 0  ;;  %s3235_s21 = smov [#allocation5]   ;;  %s3236_s23 = smov [#allocation2]  }
   0x3   :  { %s33_s22 = sshll.u32 %s3235_s21, 4  ;;  %s21_s24 = sshll.u32 %s3236_s23, 4  ;;  %s34_s22 = int_to_ptr.vmem [resolvable:$true] %s33_s22  ;;  %s3280_s24 = int_to_ptr.vmem [resolvable:$true] %s21_s24 }
   0x4   :  { %s3141_s27 = scalar_lea.hbm %s4035_s2, 2048 }
   0x5   :  { %p3142_p0 = scmp.ne.s32.totalorder %s4035_s2, %s3141_s27  ;;  %p3145_p1 = scmp.lt.u32.totalorder %s3141_s27, %s4035_s2 }
   0x7   :  { %p3147_p2 = pnand %p3145_p1, %p3142_p0 }
   0x9   :  { %3150 = shalt.err (!%p3147_p2)
}
   0xa   :  { %s3151_s8 = scalar_lea.vmem %s34_s22, 2048  ;;  %p3156_p4 = scmp.lt.s32.totalorder %s34_s22, %s34_s22 }
   0xb   :  { %p3152_p3 = scmp.ne.s32.totalorder %s34_s22, %s3151_s8  ;;  %p3157_p5 = scmp.lt.s32.totalorder %s3151_s8, %s3151_s8 }
   0xd   :  { %p3158_p6 = por %p3157_p5, %p3156_p4 }
   0xf   :  { %p3159_p7 = pnand %p3158_p6, %p3152_p3 }
  0x11   :  { %3162 = shalt.err (!%p3159_p7)
}
  0x12   :  { %s3237_s9 = smov 128   ;;  %s3238_s10 = smov 8  }
  0x13   :  { %39 = dma.hbm_to_vmem [thread:$0]  %s4035_s2, 2048, %s34_s22, [#allocation6], %s3237_s9, %s3237_s9, %s3238_s10  }
  0x14   :  { %s3163_s15 = scalar_lea.hbm %s4034_s1, 896 }
  0x15   :  { %p3164_p8 = scmp.ne.s32.totalorder %s4034_s1, %s3163_s15  ;;  %p3167_p9 = scmp.lt.u32.totalorder %s3163_s15, %s4034_s1 }
  0x17   :  { %p3169_p10 = pnand %p3167_p9, %p3164_p8 }
  0x19   :  { %3172 = shalt.err (!%p3169_p10)
}
  0x1a   :  { %s3173_s20 = scalar_lea.vmem %s3280_s24, 896  ;;  %p3178_p12 = scmp.lt.s32.totalorder %s3280_s24, %s3280_s24 }
  0x1b   :  { %p3174_p11 = scmp.ne.s32.totalorder %s3280_s24, %s3173_s20  ;;  %p3179_p13 = scmp.lt.s32.totalorder %s3173_s20, %s3173_s20 }
  0x1d   :  { %p3180_p0 = por %p3179_p13, %p3178_p12 }
  0x1f   :  { %p3181_p1 = pnand %p3180_p0, %p3174_p11 }
  0x21   :  { %3184 = shalt.err (!%p3181_p1)
}
  0x22   :  { %27 = dma.hbm_to_vmem [thread:$0]  %s4034_s1, 896, %s3280_s24, [#allocation3], %s3237_s9, %s3237_s9, %s3238_s10  }
  0x23   :  { %s3239_s22 = smov [#allocation7]   ;;  %s3185_s27 = scalar_lea.hbm %s4037_s4, 2048 }
  0x24   :  { %s47_s23 = sshll.u32 %s3239_s22, 4  ;;  %p3186_p2 = scmp.ne.s32.totalorder %s4037_s4, %s3185_s27  ;;  %s48_s23 = int_to_ptr.vmem [resolvable:$true] %s47_s23 }
  0x25   :  { %p3189_p3 = scmp.lt.u32.totalorder %s3185_s27, %s4037_s4 }
  0x27   :  { %p3191_p4 = pnand %p3189_p3, %p3186_p2 }
  0x29   :  { %3194 = shalt.err (!%p3191_p4)
}
  0x2a   :  { %s3195_s8 = scalar_lea.vmem %s48_s23, 2048  ;;  %p3200_p6 = scmp.lt.s32.totalorder %s48_s23, %s48_s23 }
  0x2b   :  { %p3196_p5 = scmp.ne.s32.totalorder %s48_s23, %s3195_s8  ;;  %p3201_p7 = scmp.lt.s32.totalorder %s3195_s8, %s3195_s8 }
  0x2d   :  { %p3202_p8 = por %p3201_p7, %p3200_p6 }
  0x2f   :  { %p3203_p9 = pnand %p3202_p8, %p3196_p5 }
  0x31   :  { %3206 = shalt.err (!%p3203_p9)
}
  0x32   :  { %53 = dma.hbm_to_vmem [thread:$0]  %s4037_s4, 2048, %s48_s23, [#allocation6], %s3237_s9, %s3237_s9, %s3238_s10  }
  0x33   :  { %3229 = dma.done.wait [#allocation3], 896  }
  0x34   :  { %3230 = vsyncadd [#allocation3], 4294966400 }
  0x35   :  { %3231 = dma.done.wait [#allocation6], 4096  }
  0x36   :  { %3232 = vsyncadd [#allocation6], 4294963200  ;;  %v3240_v0 = vmov 0   ;;  %v3241_v1 = vmov 0.0|0.0   ;;  %v65_v2 = vld [vmem:[%s4033_s0] sm:$0xff]  ;;  %v75_v4 = vld [vmem:[#allocation2 + $0x8] sm:$0xff]  ;;  %v66_v58 = vlaneseq }
  0x37   :  { %3132 = vset.pattern.permute.xlu0 %v3240_v0  ;;  %2759 = vmatprep.subr.bf16.mxu0 %v3241_v1  ;;  %v74_v3 = vld [vmem:[#allocation2] sm:$0xff]  ;;  %v89_v6 = vand.u32 4294901760, %v75_v4  ;;  %v76_v7 = vld [vmem:[#allocation2 + $0x10] sm:$0xff]  ;;  %v77_v8 = vld [vmem:[#allocation2 + $0x18] sm:$0xff]  ;;  %vm3242_vm0 = vmmov 0   ;;  %v3243_v15 = vmov 0.0  }
  0x38   :  { %2750 = vmatprep.subr.bf16.mxu1 %v3241_v1  ;;  %69 = vperm.xlu0 %3132, %v65_v2   ;;  %v86_v5 = vand.u32 4294901760, %v74_v3  ;;  %v78_v9 = vld [vmem:[#allocation2 + $0x20] sm:$0xff]  ;;  %v92_v10 = vand.u32 4294901760, %v76_v7  ;;  %v95_v11 = vand.u32 4294901760, %v77_v8  ;;  %v79_v12 = vld [vmem:[#allocation2 + $0x28] sm:$0xff]  ;;  %v80_v14 = vld [vmem:[#allocation2 + $0x30] sm:$0xff] }
  0x39   :  { %v98_v13 = vand.u32 4294901760, %v78_v9  ;;  %2259 = vmatprep.mubr.msk.f32.mxu0 %vm3242_vm0, %v3243_v15  ;;  %2242 = vmatprep.mubr.msk.f32.mxu1 %vm3242_vm0, %v3243_v15  ;;  %v3343_v17 = vsub.f32 %v75_v4, %v89_v6  ;;  %v101_v18 = vand.u32 4294901760, %v79_v12  ;;  %v3353_v23 = vand.u32 4294901760, %v80_v14  ;;  %v609_v4 = vld [vmem:[#allocation5] sm:$0xff]  ;;  %s3244_s10 = smov [#allocation8]  }
  0x3a   :  { %v3341_v16 = vsub.f32 %v74_v3, %v86_v5  ;;  %v3345_v19 = vpack.c.bf16 %v89_v6, %v86_v5  ;;  %v3347_v20 = vsub.f32 %v76_v7, %v92_v10  ;;  %v3349_v21 = vsub.f32 %v77_v8, %v95_v11  ;;  %v610_v5 = vld [vmem:[#allocation5 + $0x8] sm:$0xff]  ;;  %v611_v6 = vld [vmem:[#allocation5 + $0x10] sm:$0xff]  ;;  %s1958_s13 = sshll.u32 %s3244_s10, 4  ;;  %s1959_s13 = int_to_ptr.vmem [resolvable:$true] %s1958_s13 }
  0x3b   :  { %v3351_v22 = vsub.f32 %v78_v9, %v98_v13  ;;  %v177_v25 = vand.u32 4294901760, %v3343_v17  ;;  %v3357_v26 = vsub.f32 %v79_v12, %v101_v18  ;;  %v3360_v27 = vpack.c.bf16 %v95_v11, %v92_v10  ;;  %v612_v9 = vld [vmem:[#allocation5 + $0x18] sm:$0xff]  ;;  %v613_v11 = vld [vmem:[#allocation5 + $0x20] sm:$0xff]  ;;  %v614_v12 = vld [vmem:[#allocation5 + $0x28] sm:$0xff]  ;;  %s3207_s14 = scalar_lea.vmem %s1959_s13, 128  ;;  %p3212_p11 = scmp.lt.s32.totalorder %s1959_s13, %s1959_s13 }
  0x3c   :  { %v170_v24 = vand.u32 4294901760, %v3341_v16  ;;  %2752 = vmatpush3.bf16.msra.mxu1 %v3345_v19  ;;  %v184_v28 = vand.u32 4294901760, %v3347_v20  ;;  %v191_v29 = vand.u32 4294901760, %v3349_v21  ;;  %v2769_v34 = vpack.c.bf16 %v3343_v17, %v3341_v16  ;;  %p3208_p10 = scmp.ne.s32.totalorder %s1959_s13, %s3207_s14  ;;  %p3213_p12 = scmp.lt.s32.totalorder %s3207_s14, %s3207_s14 }
  0x3d   :  { %v198_v30 = vand.u32 4294901760, %v3351_v22  ;;  %2753 = vmatprep.subr.bf16.mxu1 %v3241_v1  ;;  %v178_v32 = vsub.f32 %v3343_v17, %v177_v25  ;;  %v205_v33 = vand.u32 4294901760, %v3357_v26  ;;  %v3375_v38 = vsub.f32 %v80_v14, %v3353_v23  ;;  %v615_v17 = vld [vmem:[#allocation5 + $0x30] sm:$0xff] }
  0x3e   :  { %v171_v31 = vsub.f32 %v3341_v16, %v170_v24  ;;  %v185_v35 = vsub.f32 %v3347_v20, %v184_v28  ;;  %v192_v36 = vsub.f32 %v3349_v21, %v191_v29  ;;  %v3379_v42 = vpack.c.bf16 %v101_v18, %v98_v13  ;;  %v616_v18 = vld [vmem:[#allocation5 + $0x38] sm:$0xff]  ;;  %p3214_p13 = por %p3213_p12, %p3212_p11 }
  0x3f   :  { %v199_v37 = vsub.f32 %v3351_v22, %v198_v30  ;;  %v179_v40 = vand.u32 4294901760, %v178_v32  ;;  %v206_v41 = vsub.f32 %v3357_v26, %v205_v33  ;;  %v2772_v46 = vpack.c.bf16 %v3349_v21, %v3347_v20 }
  0x40   :  { %v172_v39 = vand.u32 4294901760, %v171_v31  ;;  %2755 = vmatpush3.bf16.msra.mxu1 %v3360_v27  ;;  %v186_v43 = vand.u32 4294901760, %v185_v35  ;;  %v193_v44 = vand.u32 4294901760, %v192_v36  ;;  %v2775_v47 = vpack.c.bf16 %v3357_v26, %v3351_v22  ;;  %p3215_p0 = pnand %p3214_p13, %p3208_p10 }
  0x41   :  { %2756 = vmatprep.subr.bf16.mxu1 %v3241_v1  ;;  %v200_v49 = vand.u32 4294901760, %v199_v37  ;;  %v207_v50 = vand.u32 4294901760, %v206_v41  ;;  %v212_v51 = vand.u32 4294901760, %v3375_v38  ;;  %v2787_v55 = vpack.c.bf16 %v177_v25, %v170_v24  ;;  %v618_v24 = vld [vmem:[#allocation5 + $0x48] sm:$0xff]  ;;  %v620_v41 = vld [vmem:[#allocation5 + $0x58] sm:$0xff] }
  0x42   :  { %v2760_v45 = vpack.c.bf16 %v179_v40, %v172_v39  ;;  %v2763_v48 = vpack.c.bf16 %v193_v44, %v186_v43  ;;  %v2790_v56 = vpack.c.bf16 %v191_v29, %v184_v28  ;;  %v2793_v57 = vpack.c.bf16 %v205_v33, %v198_v30  ;;  %v619_v40 = vld [vmem:[#allocation5 + $0x50] sm:$0xff] }
  0x43   :  { %v2766_v52 = vpack.c.bf16 %v207_v50, %v200_v49  ;;  %v213_v53 = vsub.f32 %v3375_v38, %v212_v51  ;;  %v67_v59 = vand.u32 127, %v66_v58  ;;  %vm81_vm1 = vcmask 457728   ;;  %v623_v50 = vld [vmem:[#allocation5 + $0x70] sm:$0xff] }
  0x44   :  { %2761 = vmatpush3.bf16.msra.mxu0 %v2760_v45  ;;  %2758 = vmatpush3.bf16.msra.mxu1 %v3379_v42  ;;  %v633_v7 = vand.u32 4294901760, %v609_v4  ;;  %v636_v8 = vand.u32 4294901760, %v610_v5  ;;  %v639_v10 = vand.u32 4294901760, %v611_v6  ;;  %v642_v13 = vand.u32 4294901760, %v612_v9  ;;  %v621_v45 = vld [vmem:[#allocation5 + $0x60] sm:$0xff] }
  0x45   :  { %2762 = vmatprep.subr.bf16.mxu0 %v3241_v1  ;;  %2240 = vmatprep.subr.mxu1 %v3243_v15  ;;  %v214_v54 = vand.u32 4294901760, %v213_v53  ;;  %v645_v14 = vand.u32 4294901760, %v613_v11  ;;  %v648_v16 = vand.u32 4294901760, %v614_v12  ;;  %v651_v29 = vand.u32 4294901760, %v615_v17 }
  0x46   :  { %v3438_v20 = vpack.c.bf16 %v636_v8, %v633_v7  ;;  %v3440_v21 = vsub.f32 %v609_v4, %v633_v7  ;;  %v3442_v22 = vsub.f32 %v610_v5, %v636_v8  ;;  %v3446_v25 = vpack.c.bf16 %v642_v13, %v639_v10 }
  0x47   :  { %v3448_v26 = vsub.f32 %v612_v9, %v642_v13  ;;  %v3453_v28 = vsub.f32 %v614_v12, %v648_v16  ;;  %v654_v30 = vand.u32 4294901760, %v616_v18  ;;  %v660_v32 = vand.u32 4294901760, %v618_v24 }
  0x48   :  { %2764 = vmatpush3.bf16.msra.mxu0 %v2763_v48  ;;  %2241 = vmatpush3.msra.mxu1 %v3353_v23  ;;  %v3456_v33 = vsub.f32 %v615_v17, %v651_v29  ;;  %v3465_v37 = vpack.c.bf16 %v648_v16, %v645_v14  ;;  %v666_v43 = vand.u32 4294901760, %v620_v41 }
  0x49   :  { %2765 = vmatprep.subr.bf16.mxu0 %v3241_v1  ;;  %2804 = vmatprep.subr.bf16.mxu1 %v3241_v1  ;;  %v3462_v36 = vsub.f32 %v618_v24, %v660_v32  ;;  %v747_v5 = vand.u32 4294901760, %v3448_v26 }
  0x4b   :  { %v748_v8 = vsub.f32 %v3448_v26, %v747_v5 }
  0x4c   :  { %2767 = vmatpush3.bf16.msra.mxu0 %v2766_v52  ;;  %v675_v52 = vand.u32 4294901760, %v623_v50 }
  0x4d   :  { %2257 = vmatprep.subr.mxu0 %v3243_v15  ;;  %v749_v12 = vand.u32 4294901760, %v748_v8 }
  0x50   :  { %2258 = vmatpush3.msra.mxu0 %v214_v54  ;;  %v726_v54 = vand.u32 4294901760, %v3440_v21 }
  0x51   :  { %2768 = vmatprep.subr.bf16.mxu0 %v3241_v1 }
  0xb7   :  { %v70_v60 = vpop.permute.xlu0 %69 }
  0xb8   :  { %vm71_vm2 = vcmp.eq.s32.totalorder %v67_v59, %v70_v60  ;;  %v3498_v60 = vsub.f32 %v620_v41, %v666_v43 }
  0xb9   :  { %v1968_v61 = vsel %vm71_vm2, 1.0, %v3243_v15 }
  0xba   :  { %v83_v62 = vsel %vm81_vm1, %v1968_v61, 0  ;;  %2260 = vmatmul.mubr.msk.f32.vlgmr.msra.gmra.mrb[0].mxu0 %vm81_vm1, %v1968_v61 }
  0xbb   :  { %v158_v63 = vsub.f32 %v83_v62, %v83_v62  ;;  %2770 = vmatpush3.bf16.msra.mxu0 %v2769_v34  ;;  %2276 = vmatprep.mubr.msk.f32.mxu0 %vm3242_vm0, %v3243_v15  ;;  %v3458_v34 = vsub.f32 %v616_v18, %v654_v30 }
  0xbc   :  { %2771 = vmatprep.subr.bf16.mxu0 %v3241_v1 }
  0xbd   :  { %v159_v0 = vand.u32 4294901760, %v158_v63  ;;  %v775_v24 = vand.u32 4294901760, %v3458_v34 }
  0xbf   :  { %2773 = vmatpush3.bf16.msra.mxu0 %v2772_v46  ;;  %v160_v2 = vsub.f32 %v158_v63, %v159_v0  ;;  %v622_v46 = vld [vmem:[#allocation5 + $0x68] sm:$0xff] }
  0xc0   :  { %2774 = vmatprep.subr.bf16.mxu0 %v3241_v1  ;;  %v672_v48 = vand.u32 4294901760, %v622_v46 }
  0xc1   :  { %v161_v3 = vand.u32 4294901760, %v160_v2 }
  0xc2   :  { %v3502_v62 = vsub.f32 %v622_v46, %v672_v48 }
  0xc3   :  { %2776 = vmatpush3.bf16.msra.mxu0 %v2775_v47  ;;  %2243 = vmatmul.mubr.f32.vlgmr.msra.gmra.mrb[0].mxu1 %v161_v3  ;;  %v669_v47 = vand.u32 4294901760, %v621_v45 }
  0xc4   :  { %2274 = vmatprep.subr.mxu0 %v3243_v15  ;;  %2362 = vmatprep.mubr.msk.f32.mxu1 %vm3242_vm0, %v3243_v15 }
  0xc5   :  { %2806 = vmatpush3.bf16.msra.mxu1 %v3438_v20  ;;  %v3482_v49 = vpack.c.bf16 %v672_v48, %v669_v47 }
  0xc6   :  { %2807 = vmatprep.subr.bf16.mxu1 %v3241_v1 }
  0xc7   :  { %2275 = vmatpush3.msra.mxu0 %v3375_v38  ;;  %v3469_v38 = vpack.c.bf16 %v654_v30, %v651_v29 }
  0xc8   :  { %2277 = vmatmul.mubr.f32.vlgmr.msra.gmra.mrb[0].mxu0 %v158_v63  ;;  %2777 = vmatprep.subr.bf16.mxu0 %v3241_v1  ;;  %v3505_v63 = vsub.f32 %v623_v50, %v675_v52 }
  0xc9   :  { %2779 = vmatpush3.bf16.msra.mxu0 %v3345_v19  ;;  %2293 = vmatprep.mubr.msk.f32.mxu0 %vm3242_vm0, %v3243_v15 }
  0xca   :  { %2780 = vmatprep.subr.bf16.mxu0 %v3241_v1  ;;  %2809 = vmatpush3.bf16.msra.mxu1 %v3446_v25 }
  0xcb   :  { %2810 = vmatprep.subr.bf16.mxu1 %v3241_v1 }
  0xcd   :  { %2782 = vmatpush3.bf16.msra.mxu0 %v3360_v27 }
  0xce   :  { %2783 = vmatprep.subr.bf16.mxu0 %v3241_v1  ;;  %2812 = vmatpush3.bf16.msra.mxu1 %v3465_v37 }
  0xcf   :  { %2813 = vmatprep.subr.bf16.mxu1 %v3241_v1 }
  0xd1   :  { %2785 = vmatpush3.bf16.msra.mxu0 %v3379_v42 }
  0xd2   :  { %2291 = vmatprep.subr.mxu0 %v3243_v15  ;;  %2815 = vmatpush3.bf16.msra.mxu1 %v3469_v38 }
  0xd3   :  { %2816 = vmatprep.subr.bf16.mxu1 %v3241_v1 }
  0xd5   :  { %2292 = vmatpush3.msra.mxu0 %v3353_v23 }
  0xd6   :  { %2294 = vmatmul.mubr.f32.vlgmr.msra.gmra.mrb[0].mxu0 %v159_v0  ;;  %2786 = vmatprep.subr.bf16.mxu0 %v3241_v1 }
  0xd7   :  { %2788 = vmatpush3.bf16.msra.mxu0 %v2787_v55  ;;  %2310 = vmatprep.mubr.msk.f32.mxu0 %vm3242_vm0, %v3243_v15  ;;  %v733_v55 = vand.u32 4294901760, %v3442_v22 }
  0xd8   :  { %2789 = vmatprep.subr.bf16.mxu0 %v3241_v1 }
  0xd9   :  { %v734_v58 = vsub.f32 %v3442_v22, %v733_v55 }
  0xdb   :  { %2791 = vmatpush3.bf16.msra.mxu0 %v2790_v56  ;;  %v735_v3 = vand.u32 4294901760, %v734_v58 }
  0xdc   :  { %2792 = vmatprep.subr.bf16.mxu0 %v3241_v1 }
  0xdf   :  { %2794 = vmatpush3.bf16.msra.mxu0 %v2793_v57  ;;  %v727_v57 = vsub.f32 %v3440_v21, %v726_v54 }
  0xe0   :  { %2308 = vmatprep.subr.mxu0 %v3243_v15 }
  0xe1   :  { %v728_v2 = vand.u32 4294901760, %v727_v57 }
  0xe3   :  { %2309 = vmatpush3.msra.mxu0 %v212_v51  ;;  %v624_v51 = vld [vmem:[#allocation5 + $0x78] sm:$0xff] }
  0xe4   :  { %2311 = vmatmul.mubr.msk.f32.vlgmr.msra.gmra.mrb[0].mxu0 %vm81_vm1, %v1968_v61  ;;  %2795 = vmatprep.subr.bf16.mxu0 %v3241_v1  ;;  %v678_v53 = vand.u32 4294901760, %v624_v51 }
  0xe5   :  { %2797 = vmatpush3.bf16.msra.mxu0 %v3345_v19  ;;  %2327 = vmatprep.mubr.msk.f32.mxu0 %vm3242_vm0, %v3243_v15  ;;  %v617_v19 = vld [vmem:[#allocation5 + $0x40] sm:$0xff] }
  0xe6   :  { %2798 = vmatprep.subr.bf16.mxu0 %v3241_v1  ;;  %v657_v31 = vand.u32 4294901760, %v617_v19  ;;  %v3488_v56 = vpack.c.bf16 %v678_v53, %v675_v52  ;;  %v3507_v0 = vsub.f32 %v624_v51, %v678_v53  ;;  %v803_v51 = vand.u32 4294901760, %v3498_v60 }
  0xe8   :  { %v3460_v35 = vsub.f32 %v617_v19, %v657_v31  ;;  %v3473_v39 = vpack.c.bf16 %v660_v32, %v657_v31  ;;  %v768_v19 = vand.u32 4294901760, %v3456_v33  ;;  %v776_v31 = vsub.f32 %v3458_v34, %v775_v24 }
  0xe9   :  { %2800 = vmatpush3.bf16.msra.mxu0 %v3360_v27  ;;  %v3450_v27 = vsub.f32 %v613_v11, %v645_v14  ;;  %v804_v57 = vsub.f32 %v3498_v60, %v803_v51 }
  0xea   :  { %2801 = vmatprep.subr.bf16.mxu0 %v3241_v1  ;;  %2818 = vmatpush3.bf16.msra.mxu1 %v3473_v39  ;;  %v769_v30 = vsub.f32 %v3456_v33, %v768_v19  ;;  %v782_v41 = vand.u32 4294901760, %v3460_v35 }
  0xeb   :  { %2819 = vmatprep.subr.bf16.mxu1 %v3241_v1  ;;  %v754_v9 = vand.u32 4294901760, %v3450_v27 }
  0xec   :  { %v770_v32 = vand.u32 4294901760, %v769_v30 }
  0xed   :  { %2803 = vmatpush3.bf16.msra.mxu0 %v3379_v42  ;;  %v663_v42 = vand.u32 4294901760, %v619_v40  ;;  %v755_v13 = vsub.f32 %v3450_v27, %v754_v9 }
  0xee   :  { %2325 = vmatprep.subr.mxu0 %v3243_v15 }
  0xef   :  { %v3478_v44 = vpack.c.bf16 %v666_v43, %v663_v42  ;;  %v3496_v59 = vsub.f32 %v619_v40, %v663_v42  ;;  %v756_v17 = vand.u32 4294901760, %v755_v13  ;;  %v777_v40 = vand.u32 4294901760, %v776_v31 }
  0xf0   :  { %v789_v42 = vand.u32 4294901760, %v3462_v36 }
  0xf1   :  { %2326 = vmatpush3.msra.mxu0 %v3353_v23  ;;  %v3444_v23 = vsub.f32 %v611_v6, %v639_v10  ;;  %2821 = vmatpush3.bf16.msra.mxu1 %v3478_v44  ;;  %v3512_v6 = vpack.c.bf16 %v735_v3, %v728_v2  ;;  %v761_v10 = vand.u32 4294901760, %v3453_v28  ;;  %v2838_v43 = vpack.c.bf16 %v777_v40, %v770_v32 }
  0xf2   :  { %2328 = vmatmul.mubr.msk.f32.vlgmr.msra.gmra.mrb[0].mxu0 %vm81_vm1, %v1968_v61  ;;  %2972 = vmatprep.subr.bf16.mxu0 %v3241_v1  ;;  %v3500_v61 = vsub.f32 %v621_v45, %v669_v47  ;;  %v783_v45 = vsub.f32 %v3460_v35, %v782_v41  ;;  %v790_v46 = vsub.f32 %v3462_v36, %v789_v42  ;;  %v796_v50 = vand.u32 4294901760, %v3496_v59 }
  0xf3   :  { %2607 = vmatprep.mubr.msk.f32.mxu0 %vm3242_vm0, %v3243_v15  ;;  %2822 = vmatprep.subr.bf16.mxu1 %v3241_v1  ;;  %v740_v4 = vand.u32 4294901760, %v3444_v23  ;;  %v762_v14 = vsub.f32 %v3453_v28, %v761_v10  ;;  %v805_v2 = vand.u32 4294901760, %v804_v57  ;;  %v2862_v57 = vpack.c.bf16 %v3458_v34, %v3456_v33 }
  0xf4   :  { %v784_v47 = vand.u32 4294901760, %v783_v45  ;;  %v791_v48 = vand.u32 4294901760, %v790_v46  ;;  %v797_v53 = vsub.f32 %v3496_v59, %v796_v50  ;;  %v4043_v3 = vand.u32 4294901760, %v3500_v61 }
  0xf5   :  { %2824 = vmatpush3.bf16.msra.mxu1 %v3482_v49  ;;  %v741_v7 = vsub.f32 %v3444_v23, %v740_v4  ;;  %v763_v18 = vand.u32 4294901760, %v762_v14  ;;  %v4046_v34 = vand.u32 4294901760, %v3505_v63 }
  0xf6   :  { %2825 = vmatprep.subr.bf16.mxu1 %v3241_v1  ;;  %v2841_v52 = vpack.c.bf16 %v791_v48, %v784_v47  ;;  %v798_v58 = vand.u32 4294901760, %v797_v53  ;;  %v2853_v47 = vpack.c.bf16 %v3442_v22, %v3440_v21  ;;  %v2856_v48 = vpack.c.bf16 %v3448_v26, %v3444_v23 }
  0xf7   :  { %v742_v11 = vand.u32 4294901760, %v741_v7  ;;  %v2835_v29 = vpack.c.bf16 %v763_v18, %v756_v17  ;;  %v4042_v7 = vand.u32 4294901760, %v3502_v62  ;;  %v4041_v17 = vand.u32 4294901760, %v3505_v63 }
  0xf8   :  { %v2844_v8 = vpack.c.bf16 %v805_v2, %v798_v58  ;;  %v4040_v18 = vand.u32 4294901760, %v3507_v0  ;;  %v2859_v53 = vpack.c.bf16 %v3453_v28, %v3450_v27  ;;  %v2865_v58 = vpack.c.bf16 %v3462_v36, %v3460_v35 }
  0xf9   :  { %2827 = vmatpush3.bf16.msra.mxu1 %v3488_v56  ;;  %v2832_v16 = vpack.c.bf16 %v749_v12, %v742_v11  ;;  %v811_v11 = vsub.f32 %v3500_v61, %v4043_v3  ;;  %v818_v12 = vsub.f32 %v3502_v62, %v4042_v7  ;;  %v825_v31 = vsub.f32 %v3505_v63, %v4041_v17 }
  0xfa   :  { %2828 = vmatprep.subr.bf16.mxu1 %v3241_v1  ;;  %v832_v32 = vsub.f32 %v3507_v0, %v4040_v18  ;;  %v2868_v2 = vpack.c.bf16 %v3498_v60, %v3496_v59  ;;  %v2907_v21 = vpack.c.bf16 %v761_v10, %v754_v9  ;;  %v2910_v22 = vpack.c.bf16 %v775_v24, %v768_v19 }
  0xfb   :  { %v812_v13 = vand.u32 4294901760, %v811_v11  ;;  %v819_v14 = vand.u32 4294901760, %v818_v12  ;;  %v826_v40 = vand.u32 4294901760, %v825_v31  ;;  %v2871_v11 = vpack.c.bf16 %v3502_v62, %v3500_v61 }
  0xfc   :  { %v833_v45 = vand.u32 4294901760, %v832_v32  ;;  %v2874_v12 = vpack.c.bf16 %v3507_v0, %v3505_v63  ;;  %v2913_v23 = vpack.c.bf16 %v789_v42, %v782_v41  ;;  %v2916_v26 = vpack.c.bf16 %v803_v51, %v796_v50 }
  0xfd   :  { %v2847_v30 = vpack.c.bf16 %v819_v14, %v812_v13  ;;  %v4044_v27 = vand.u32 4294901760, %v3500_v61  ;;  %v4045_v28 = vand.u32 4294901760, %v3502_v62  ;;  %v4047_v35 = vand.u32 4294901760, %v3507_v0 }
  0xfe   :  { %v2850_v46 = vpack.c.bf16 %v833_v45, %v826_v40 }
  0xff   :  { %v2919_v33 = vpack.c.bf16 %v4045_v28, %v4044_v27  ;;  %v2922_v36 = vpack.c.bf16 %v4047_v35, %v4046_v34  ;;  %v3795_v27 = vld [vmem:[#allocation7 + $0x50] sm:$0xff]  ;;  %v3797_v28 = vld [vmem:[#allocation7 + $0x58] sm:$0xff] }
 0x196   :  { %v163_v13 = vpop.f32.mrb[0].mxu1 }
 0x197   :  { %v2244_v14 = vpop.f32.mrb[1].mxu1 }
 0x1c5   :  { %v605_v31 = vpop.f32.mrb[0].mxu0 }
 0x1c6   :  { %v3092_v32 = vadd.f32 %v605_v31, %v163_v13  ;;  %v2329_v40 = vpop.f32.mrb[1].mxu0 }
 0x1c8   :  { %v3584_v45 = vand.u32 4294901760, %v3092_v32 }
 0x1ca   :  { %v714_v18 = vsub.f32 %v3092_v32, %v3584_v45 }
 0x1cc   :  { %v715_v17 = vand.u32 4294901760, %v714_v18 }
 0x1ce   :  { %v716_v7 = vsub.f32 %v714_v18, %v715_v17 }
 0x1d0   :  { %v717_v3 = vand.u32 4294901760, %v716_v7  ;;  %v3745_v7 = vld [vmem:[#allocation7 + $0x38] sm:$0xff] }
 0x1d2   :  { %2363 = vmatmul.mubr.f32.vlgmr.msra.gmra.mrb[2].mxu1 %v717_v3  ;;  %v3743_v3 = vld [vmem:[#allocation7 + $0x30] sm:$0xff] }
 0x1d3   :  { %2830 = vmatpush3.bf16.msra.mxu1 %v3512_v6  ;;  %2397 = vmatprep.mubr.msk.f32.mxu1 %vm3242_vm0, %v3243_v15  ;;  %v2901_v6 = vpack.c.bf16 %v733_v55, %v726_v54  ;;  %v3697_v54 = vld [vmem:[#allocation7 + $0x18] sm:$0xff] }
 0x1d4   :  { %2831 = vmatprep.subr.bf16.mxu1 %v3241_v1  ;;  %v1313_v60 = vand.u32 4294901760, %v3697_v54 }
 0x1d6   :  { %v3717_v0 = vsub.f32 %v3697_v54, %v1313_v60 }
 0x1d7   :  { %2833 = vmatpush3.bf16.msra.mxu1 %v2832_v16  ;;  %v2904_v16 = vpack.c.bf16 %v747_v5, %v740_v4  ;;  %v3719_v4 = vld [vmem:[#allocation7 + $0x20] sm:$0xff]  ;;  %v3721_v5 = vld [vmem:[#allocation7 + $0x28] sm:$0xff] }
 0x1d8   :  { %2834 = vmatprep.subr.bf16.mxu1 %v3241_v1  ;;  %v1418_v24 = vand.u32 4294901760, %v3717_v0  ;;  %v1319_v41 = vand.u32 4294901760, %v3721_v5 }
 0x1da   :  { %v1419_v50 = vsub.f32 %v3717_v0, %v1418_v24 }
 0x1db   :  { %2836 = vmatpush3.bf16.msra.mxu1 %v2835_v29  ;;  %v1316_v29 = vand.u32 4294901760, %v3719_v4 }
 0x1dc   :  { %2837 = vmatprep.subr.bf16.mxu1 %v3241_v1 }
 0x1dd   :  { %v3736_v51 = vsub.f32 %v3719_v4, %v1316_v29 }
 0x1df   :  { %2839 = vmatpush3.bf16.msra.mxu1 %v2838_v43 }
 0x1e0   :  { %2840 = vmatprep.subr.bf16.mxu1 %v3241_v1 }
 0x1e3   :  { %2842 = vmatpush3.bf16.msra.mxu1 %v2841_v52  ;;  %v3741_v52 = vsub.f32 %v3721_v5, %v1319_v41 }
 0x1e4   :  { %2843 = vmatprep.subr.bf16.mxu1 %v3241_v1 }
 0x1e7   :  { %2845 = vmatpush3.bf16.msra.mxu1 %v2844_v8 }
 0x1e8   :  { %2846 = vmatprep.subr.bf16.mxu1 %v3241_v1 }
 0x1eb   :  { %2848 = vmatpush3.bf16.msra.mxu1 %v2847_v30  ;;  %v1325_v30 = vand.u32 4294901760, %v3745_v7 }
 0x1ec   :  { %2849 = vmatprep.subr.bf16.mxu1 %v3241_v1 }
 0x1ef   :  { %2851 = vmatpush3.bf16.msra.mxu1 %v2850_v46  ;;  %v1425_v46 = vand.u32 4294901760, %v3736_v51 }
 0x1f0   :  { %2852 = vmatprep.subr.bf16.mxu1 %v3241_v1 }
 0x1f2   :  { %2398 = vmatmul.mubr.f32.vlgmr.msra.gmra.mrb[2].mxu1 %v3584_v45 }
 0x1f3   :  { %2854 = vmatpush3.bf16.msra.mxu1 %v2853_v47  ;;  %2432 = vmatprep.mubr.msk.f32.mxu1 %vm3242_vm0, %v3243_v15  ;;  %v1432_v47 = vand.u32 4294901760, %v3741_v52 }
 0x1f4   :  { %2855 = vmatprep.subr.bf16.mxu1 %v3241_v1 }
 0x1f7   :  { %2857 = vmatpush3.bf16.msra.mxu1 %v2856_v48 }
 0x1f8   :  { %2858 = vmatprep.subr.bf16.mxu1 %v3241_v1 }
 0x1fb   :  { %2860 = vmatpush3.bf16.msra.mxu1 %v2859_v53 }
 0x1fc   :  { %2861 = vmatprep.subr.bf16.mxu1 %v3241_v1 }
 0x1ff   :  { %2863 = vmatpush3.bf16.msra.mxu1 %v2862_v57  ;;  %v3760_v57 = vsub.f32 %v3745_v7, %v1325_v30 }
 0x200   :  { %2864 = vmatprep.subr.bf16.mxu1 %v3241_v1 }
 0x201   :  { %v1446_v14 = vand.u32 4294901760, %v3760_v57 }
 0x203   :  { %2866 = vmatpush3.bf16.msra.mxu1 %v2865_v58  ;;  %v1426_v58 = vsub.f32 %v3736_v51, %v1425_v46 }
 0x204   :  { %2867 = vmatprep.subr.bf16.mxu1 %v3241_v1 }
 0x205   :  { %v1427_v40 = vand.u32 4294901760, %v1426_v58 }
 0x207   :  { %2869 = vmatpush3.bf16.msra.mxu1 %v2868_v2  ;;  %v1433_v2 = vsub.f32 %v3741_v52, %v1432_v47 }
 0x208   :  { %2870 = vmatprep.subr.bf16.mxu1 %v3241_v1 }
 0x20b   :  { %2872 = vmatpush3.bf16.msra.mxu1 %v2871_v11  ;;  %v3768_v11 = vld [vmem:[#allocation7 + $0x40] sm:$0xff] }
 0x20c   :  { %2873 = vmatprep.subr.bf16.mxu1 %v3241_v1  ;;  %v1328_v31 = vand.u32 4294901760, %v3768_v11 }
 0x20f   :  { %2875 = vmatpush3.bf16.msra.mxu1 %v2874_v12  ;;  %v3770_v12 = vld [vmem:[#allocation7 + $0x48] sm:$0xff] }
 0x210   :  { %2876 = vmatprep.subr.bf16.mxu1 %v3241_v1  ;;  %v1331_v32 = vand.u32 4294901760, %v3770_v12 }
 0x212   :  { %2433 = vmatmul.mubr.f32.vlgmr.msra.gmra.mrb[2].mxu1 %v714_v18  ;;  %v1322_v18 = vand.u32 4294901760, %v3743_v3 }
 0x213   :  { %2878 = vmatpush3.bf16.msra.mxu1 %v3438_v20  ;;  %2467 = vmatprep.mubr.msk.f32.mxu1 %vm3242_vm0, %v3243_v15 }
 0x214   :  { %2879 = vmatprep.subr.bf16.mxu1 %v3241_v1  ;;  %v3755_v53 = vsub.f32 %v3743_v3, %v1322_v18 }
 0x216   :  { %v1439_v13 = vand.u32 4294901760, %v3755_v53 }
 0x217   :  { %2881 = vmatpush3.bf16.msra.mxu1 %v3446_v25 }
 0x218   :  { %2882 = vmatprep.subr.bf16.mxu1 %v3241_v1 }
 0x21b   :  { %2884 = vmatpush3.bf16.msra.mxu1 %v3465_v37 }
 0x21c   :  { %2885 = vmatprep.subr.bf16.mxu1 %v3241_v1 }
 0x21f   :  { %2887 = vmatpush3.bf16.msra.mxu1 %v3469_v38 }
 0x220   :  { %2888 = vmatprep.subr.bf16.mxu1 %v3241_v1 }
 0x223   :  { %2890 = vmatpush3.bf16.msra.mxu1 %v3473_v39 }
 0x224   :  { %2891 = vmatprep.subr.bf16.mxu1 %v3241_v1 }
 0x227   :  { %2893 = vmatpush3.bf16.msra.mxu1 %v3478_v44 }
 0x228   :  { %2894 = vmatprep.subr.bf16.mxu1 %v3241_v1 }
 0x22b   :  { %2896 = vmatpush3.bf16.msra.mxu1 %v3482_v49 }
 0x22c   :  { %2897 = vmatprep.subr.bf16.mxu1 %v3241_v1 }
 0x22f   :  { %2899 = vmatpush3.bf16.msra.mxu1 %v3488_v56 }
 0x230   :  { %2900 = vmatprep.subr.bf16.mxu1 %v3241_v1 }
 0x232   :  { %2468 = vmatmul.mubr.f32.vlgmr.msra.gmra.mrb[2].mxu1 %v715_v17  ;;  %v1420_v17 = vand.u32 4294901760, %v1419_v50 }
 0x233   :  { %2902 = vmatpush3.bf16.msra.mxu1 %v2901_v6  ;;  %2502 = vmatprep.mubr.msk.f32.mxu1 %vm3242_vm0, %v3243_v15  ;;  %v1440_v6 = vsub.f32 %v3755_v53, %v1439_v13 }
 0x234   :  { %2903 = vmatprep.subr.bf16.mxu1 %v3241_v1 }
 0x237   :  { %2905 = vmatpush3.bf16.msra.mxu1 %v2904_v16  ;;  %v1447_v16 = vsub.f32 %v3760_v57, %v1446_v14 }
 0x238   :  { %2906 = vmatprep.subr.bf16.mxu1 %v3241_v1 }
 0x239   :  { %v1448_v34 = vand.u32 4294901760, %v1447_v16  ;;  %v1295_v16 = vld [vmem:[#allocation7 + $0x78] sm:$0xff] }
 0x23a   :  { %v1349_v4 = vand.u32 4294901760, %v1295_v16 }
 0x23b   :  { %2908 = vmatpush3.bf16.msra.mxu1 %v2907_v21  ;;  %v3786_v21 = vsub.f32 %v3768_v11, %v1328_v31 }
 0x23c   :  { %2909 = vmatprep.subr.bf16.mxu1 %v3241_v1 }
 0x23d   :  { %v1453_v35 = vand.u32 4294901760, %v3786_v21 }
 0x23f   :  { %2911 = vmatpush3.bf16.msra.mxu1 %v2910_v22  ;;  %v3791_v22 = vsub.f32 %v3770_v12, %v1331_v32 }
 0x240   :  { %2912 = vmatprep.subr.bf16.mxu1 %v3241_v1 }
 0x243   :  { %2914 = vmatpush3.bf16.msra.mxu1 %v2913_v23 }
 0x244   :  { %2915 = vmatprep.subr.bf16.mxu1 %v3241_v1 }
 0x247   :  { %2917 = vmatpush3.bf16.msra.mxu1 %v2916_v26 }
 0x248   :  { %2918 = vmatprep.subr.bf16.mxu1 %v3241_v1 }
 0x24b   :  { %2920 = vmatpush3.bf16.msra.mxu1 %v2919_v33  ;;  %v1441_v33 = vand.u32 4294901760, %v1440_v6  ;;  %v1294_v6 = vld [vmem:[#allocation7 + $0x70] sm:$0xff] }
 0x24c   :  { %2921 = vmatprep.subr.bf16.mxu1 %v3241_v1 }
 0x24f   :  { %2923 = vmatpush3.bf16.msra.mxu1 %v2922_v36  ;;  %v1460_v36 = vand.u32 4294901760, %v3791_v22 }
 0x250   :  { %2924 = vmatprep.subr.bf16.mxu1 %v3241_v1 }
 0x252   :  { %2503 = vmatmul.mubr.f32.vlgmr.msra.gmra.mrb[2].mxu1 %v3584_v45 }
 0x253   :  { %2926 = vmatpush3.bf16.msra.mxu1 %v3438_v20  ;;  %2537 = vmatprep.mubr.msk.f32.mxu1 %vm3242_vm0, %v3243_v15  ;;  %v1280_v20 = vld [vmem:[#allocation7] sm:$0xff] }
 0x254   :  { %2927 = vmatprep.subr.bf16.mxu1 %v3241_v1 }
 0x257   :  { %2929 = vmatpush3.bf16.msra.mxu1 %v3446_v25  ;;  %v1281_v25 = vld [vmem:[#allocation7 + $0x8] sm:$0xff] }
 0x258   :  { %2930 = vmatprep.subr.bf16.mxu1 %v3241_v1 }
 0x25b   :  { %2932 = vmatpush3.bf16.msra.mxu1 %v3465_v37  ;;  %v1304_v37 = vand.u32 4294901760, %v1280_v20 }
 0x25c   :  { %2933 = vmatprep.subr.bf16.mxu1 %v3241_v1 }
 0x25f   :  { %2935 = vmatpush3.bf16.msra.mxu1 %v3469_v38  ;;  %v1307_v38 = vand.u32 4294901760, %v1281_v25 }
 0x260   :  { %2936 = vmatprep.subr.bf16.mxu1 %v3241_v1 }
 0x261   :  { %v3793_v26 = vpack.c.bf16 %v1307_v38, %v1304_v37 }
 0x263   :  { %2938 = vmatpush3.bf16.msra.mxu1 %v3473_v39  ;;  %v3691_v39 = vsub.f32 %v1280_v20, %v1304_v37  ;;  %v1334_v20 = vand.u32 4294901760, %v3795_v27  ;;  %v2982_v37 = vpack.c.bf16 %v1448_v34, %v1441_v33  ;;  %v1346_v34 = vand.u32 4294901760, %v1294_v6 }
 0x264   :  { %2939 = vmatprep.subr.bf16.mxu1 %v3241_v1 }
 0x265   :  { %v1397_v55 = vand.u32 4294901760, %v3691_v39 }
 0x267   :  { %2941 = vmatpush3.bf16.msra.mxu1 %v3478_v44  ;;  %v3693_v44 = vsub.f32 %v1281_v25, %v1307_v38  ;;  %v1398_v61 = vsub.f32 %v3691_v39, %v1397_v55  ;;  %v1337_v25 = vand.u32 4294901760, %v3797_v28  ;;  %v1454_v38 = vsub.f32 %v3786_v21, %v1453_v35 }
 0x268   :  { %2942 = vmatprep.subr.bf16.mxu1 %v3241_v1 }
 0x269   :  { %v1399_v9 = vand.u32 4294901760, %v1398_v61  ;;  %v1461_v61 = vsub.f32 %v3791_v22, %v1460_v36  ;;  %v1455_v50 = vand.u32 4294901760, %v1454_v38  ;;  %v3860_v38 = vsub.f32 %v1294_v6, %v1346_v34 }
 0x26a   :  { %v3894_v11 = vpack.c.bf16 %v1337_v25, %v1334_v20  ;;  %v2997_v12 = vpack.c.bf16 %v3693_v44, %v3691_v39  ;;  %v3051_v39 = vpack.c.bf16 %v1432_v47, %v1425_v46 }
 0x26b   :  { %2944 = vmatpush3.bf16.msra.mxu1 %v3482_v49  ;;  %v3695_v49 = vld [vmem:[#allocation7 + $0x10] sm:$0xff] }
 0x26c   :  { %2945 = vmatprep.subr.bf16.mxu1 %v3241_v1  ;;  %v1310_v59 = vand.u32 4294901760, %v3695_v49 }
 0x26e   :  { %v3712_v63 = vsub.f32 %v3695_v49, %v1310_v59 }
 0x26f   :  { %2947 = vmatpush3.bf16.msra.mxu1 %v3488_v56  ;;  %v1404_v56 = vand.u32 4294901760, %v3693_v44 }
 0x270   :  { %2948 = vmatprep.subr.bf16.mxu1 %v3241_v1  ;;  %v1411_v19 = vand.u32 4294901760, %v3712_v63 }
 0x271   :  { %v1405_v62 = vsub.f32 %v3693_v44, %v1404_v56  ;;  %v3054_v44 = vpack.c.bf16 %v1446_v14, %v1439_v13 }
 0x272   :  { %2538 = vmatmul.mubr.f32.vlgmr.msra.gmra.mrb[2].mxu1 %v3584_v45  ;;  %v1412_v43 = vsub.f32 %v3712_v63, %v1411_v19  ;;  %v1434_v45 = vand.u32 4294901760, %v1433_v2  ;;  %v3841_v2 = vpack.c.bf16 %v1319_v41, %v1316_v29 }
 0x273   :  { %2572 = vmatprep.mubr.msk.f32.mxu1 %vm3242_vm0, %v3243_v15  ;;  %v1406_v10 = vand.u32 4294901760, %v1405_v62  ;;  %2950 = vmatpush3.bf16.msra.mxu1 %v3793_v26  ;;  %v3816_v62 = vpack.c.bf16 %v1313_v60, %v1310_v59 }
 0x274   :  { %v1413_v8 = vand.u32 4294901760, %v1412_v43  ;;  %v2979_v23 = vpack.c.bf16 %v1434_v45, %v1427_v40  ;;  %2951 = vmatprep.subr.bf16.mxu1 %v3241_v1  ;;  %v1293_v43 = vld [vmem:[#allocation7 + $0x68] sm:$0xff] }
 0x275   :  { %v2973_v42 = vpack.c.bf16 %v1406_v10, %v1399_v9  ;;  %v3821_v9 = vsub.f32 %v3795_v27, %v1334_v20  ;;  %v3826_v10 = vsub.f32 %v3797_v28, %v1337_v25  ;;  %v1343_v49 = vand.u32 4294901760, %v1293_v43 }
 0x276   :  { %v2976_v48 = vpack.c.bf16 %v1420_v17, %v1413_v8  ;;  %v1462_v8 = vand.u32 4294901760, %v1461_v61  ;;  %v3907_v27 = vpack.c.bf16 %v1349_v4, %v1346_v34  ;;  %v3003_v28 = vpack.c.bf16 %v3741_v52, %v3736_v51 }
 0x277   :  { %2974 = vmatpush3.bf16.msra.mxu0 %v2973_v42  ;;  %v1292_v42 = vld [vmem:[#allocation7 + $0x60] sm:$0xff]  ;;  %2953 = vmatpush3.bf16.msra.mxu1 %v3816_v62  ;;  %v1467_v54 = vand.u32 4294901760, %v3821_v9  ;;  %v1474_v59 = vand.u32 4294901760, %v3826_v10  ;;  %v3835_v58 = vsub.f32 %v1293_v43, %v1343_v49  ;;  %v3868_v43 = vsub.f32 %v1295_v16, %v1349_v4  ;;  %v1972_v4 = vld [vmem:[%s4036_s3] ss:$0 sm:$0xff] }
 0x278   :  { %2975 = vmatprep.subr.bf16.mxu0 %v3241_v1  ;;  %v1340_v17 = vand.u32 4294901760, %v1292_v42  ;;  %2954 = vmatprep.subr.bf16.mxu1 %v3241_v1  ;;  %v2985_v60 = vpack.c.bf16 %v1462_v8, %v1455_v50  ;;  %v3006_v20 = vpack.c.bf16 %v3760_v57, %v3755_v53  ;;  %v3009_v25 = vpack.c.bf16 %v3791_v22, %v3786_v21 }
 0x279   :  { %v1468_v40 = vsub.f32 %v3821_v9, %v1467_v54  ;;  %v1475_v45 = vsub.f32 %v3826_v10, %v1474_v59  ;;  %v1488_v33 = vand.u32 4294901760, %v3835_v58  ;;  %v3018_v34 = vpack.c.bf16 %v3868_v43, %v3860_v38 }
 0x27b   :  { %2977 = vmatpush3.bf16.msra.mxu0 %v2976_v48  ;;  %v3833_v48 = vsub.f32 %v1292_v42, %v1340_v17  ;;  %2956 = vmatpush3.bf16.msra.mxu1 %v3841_v2  ;;  %v1469_v5 = vand.u32 4294901760, %v1468_v40  ;;  %v1476_v29 = vand.u32 4294901760, %v1475_v45  ;;  %v3866_v42 = vpack.c.bf16 %v1325_v30, %v1322_v18 }
 0x27c   :  { %2978 = vmatprep.subr.bf16.mxu0 %v3241_v1  ;;  %2957 = vmatprep.subr.bf16.mxu1 %v3241_v1  ;;  %v1502_v40 = vand.u32 4294901760, %v3868_v43  ;;  %v3882_v18 = vpack.c.bf16 %v1331_v32, %v1328_v31  ;;  %v3901_v31 = vpack.c.bf16 %v1343_v49, %v1340_v17  ;;  %v3000_v32 = vpack.c.bf16 %v3717_v0, %v3712_v63 }
 0x27d   :  { %v2988_v61 = vpack.c.bf16 %v1476_v29, %v1469_v5  ;;  %v3012_v17 = vpack.c.bf16 %v3826_v10, %v3821_v9  ;;  %v3015_v49 = vpack.c.bf16 %v3835_v58, %v3833_v48 }
 0x27e   :  { %v1503_v30 = vsub.f32 %v3868_v43, %v1502_v40 }
 0x27f   :  { %2980 = vmatpush3.bf16.msra.mxu0 %v2979_v23  ;;  %v1481_v23 = vand.u32 4294901760, %v3833_v48  ;;  %2959 = vmatpush3.bf16.msra.mxu1 %v3866_v42 }
 0x280   :  { %2981 = vmatprep.subr.bf16.mxu0 %v3241_v1  ;;  %2960 = vmatprep.subr.bf16.mxu1 %v3241_v1  ;;  %v1504_v6 = vand.u32 4294901760, %v1503_v30 }
 0x281   :  { %v1482_v41 = vsub.f32 %v3833_v48, %v1481_v23  ;;  %v3063_v63 = vpack.c.bf16 %v1488_v33, %v1481_v23 }
 0x283   :  { %2983 = vmatpush3.bf16.msra.mxu0 %v2982_v37  ;;  %v1489_v37 = vsub.f32 %v3835_v58, %v1488_v33  ;;  %v1483_v50 = vand.u32 4294901760, %v1482_v41  ;;  %2962 = vmatpush3.bf16.msra.mxu1 %v3882_v18 }
 0x284   :  { %2984 = vmatprep.subr.bf16.mxu0 %v3241_v1  ;;  %2963 = vmatprep.subr.bf16.mxu1 %v3241_v1 }
 0x285   :  { %v1490_v8 = vand.u32 4294901760, %v1489_v37 }
 0x287   :  { %2986 = vmatpush3.bf16.msra.mxu0 %v2985_v60  ;;  %v1495_v60 = vand.u32 4294901760, %v3860_v38  ;;  %v2991_v3 = vpack.c.bf16 %v1490_v8, %v1483_v50  ;;  %2965 = vmatpush3.bf16.msra.mxu1 %v3894_v11 }
 0x288   :  { %2987 = vmatprep.subr.bf16.mxu0 %v3241_v1  ;;  %2966 = vmatprep.subr.bf16.mxu1 %v3241_v1 }
 0x289   :  { %v1496_v7 = vsub.f32 %v3860_v38, %v1495_v60  ;;  %v3066_v0 = vpack.c.bf16 %v1502_v40, %v1495_v60 }
 0x28b   :  { %2989 = vmatpush3.bf16.msra.mxu0 %v2988_v61  ;;  %v1497_v45 = vand.u32 4294901760, %v1496_v7  ;;  %2968 = vmatpush3.bf16.msra.mxu1 %v3901_v31 }
 0x28c   :  { %2990 = vmatprep.subr.bf16.mxu0 %v3241_v1  ;;  %2969 = vmatprep.subr.bf16.mxu1 %v3241_v1 }
 0x28d   :  { %v2994_v16 = vpack.c.bf16 %v1504_v6, %v1497_v45 }
 0x28f   :  { %2992 = vmatpush3.bf16.msra.mxu0 %v2991_v3  ;;  %2971 = vmatpush3.bf16.msra.mxu1 %v3907_v27 }
 0x290   :  { %2993 = vmatprep.subr.bf16.mxu0 %v3241_v1 }
 0x293   :  { %2995 = vmatpush3.bf16.msra.mxu0 %v2994_v16 }
 0x294   :  { %2996 = vmatprep.subr.bf16.mxu0 %v3241_v1 }
 0x345   :  { %v1269_v5 = vpop.f32.mrb[2].mxu1 }
 0x346   :  { %v3093_v29 = vadd.f32 %v1972_v4, %v1269_v5  ;;  %v2539_v41 = vpop.f32.mrb[3].mxu1 }
 0x348   :  { %v1973_v37 = vmul.f32 -1.442695, %v3093_v29 }
 0x34a   :  { %3133 = vpow2.f32 %v1973_v37 }
 0x354   :  { %v3134_v61 = vpop.eup %3133 }
 0x355   :  { %v1276_v50 = vadd.f32 1.0, %v3134_v61 }
 0x357   :  { %3135 = vrcp.f32 %v1276_v50 }
 0x361   :  { %v3136_v8 = vpop.eup %3135 }
 0x362   :  { %v1279_v3 = vmul.f32 %v3136_v8, %v3093_v29 }
 0x364   :  { %v3925_v7 = vand.u32 4294901760, %v1279_v3 }
 0x366   :  { %v1385_v30 = vsub.f32 %v1279_v3, %v3925_v7  ;;  %2608 = vmatmul.mubr.f32.vlgmr.msra.gmra.mrb[2].mxu0 %v3925_v7 }
 0x367   :  { %2998 = vmatpush3.bf16.msra.mxu0 %v2997_v12  ;;  %2642 = vmatprep.mubr.msk.f32.mxu0 %vm3242_vm0, %v3243_v15  ;;  %v3045_v12 = vpack.c.bf16 %v1404_v56, %v1397_v55  ;;  %v3057_v55 = vpack.c.bf16 %v1460_v36, %v1453_v35  ;;  %v3060_v56 = vpack.c.bf16 %v1474_v59, %v1467_v54 }
 0x368   :  { %v1386_v45 = vand.u32 4294901760, %v1385_v30  ;;  %2999 = vmatprep.subr.bf16.mxu0 %v3241_v1 }
 0x36a   :  { %v1387_v6 = vsub.f32 %v1385_v30, %v1386_v45 }
 0x36b   :  { %3001 = vmatpush3.bf16.msra.mxu0 %v3000_v32  ;;  %v3048_v32 = vpack.c.bf16 %v1418_v24, %v1411_v19  ;;  %v1974_v24 = vld [vmem:[%s4038_s5] ss:$0 sm:$0xff] }
 0x36c   :  { %3002 = vmatprep.subr.bf16.mxu0 %v3241_v1  ;;  %v1388_v16 = vand.u32 4294901760, %v1387_v6 }
 0x36e   :  { %2573 = vmatmul.mubr.f32.vlgmr.msra.gmra.mrb[4].mxu1 %v1388_v16 }
 0x36f   :  { %3004 = vmatpush3.bf16.msra.mxu0 %v3003_v28 }
 0x370   :  { %3005 = vmatprep.subr.bf16.mxu0 %v3241_v1 }
 0x373   :  { %3007 = vmatpush3.bf16.msra.mxu0 %v3006_v20 }
 0x374   :  { %3008 = vmatprep.subr.bf16.mxu0 %v3241_v1 }
 0x377   :  { %3010 = vmatpush3.bf16.msra.mxu0 %v3009_v25 }
 0x378   :  { %3011 = vmatprep.subr.bf16.mxu0 %v3241_v1 }
 0x37b   :  { %3013 = vmatpush3.bf16.msra.mxu0 %v3012_v17 }
 0x37c   :  { %3014 = vmatprep.subr.bf16.mxu0 %v3241_v1 }
 0x37f   :  { %3016 = vmatpush3.bf16.msra.mxu0 %v3015_v49 }
 0x380   :  { %3017 = vmatprep.subr.bf16.mxu0 %v3241_v1 }
 0x383   :  { %3019 = vmatpush3.bf16.msra.mxu0 %v3018_v34 }
 0x384   :  { %3020 = vmatprep.subr.bf16.mxu0 %v3241_v1 }
 0x386   :  { %2643 = vmatmul.mubr.f32.vlgmr.msra.gmra.mrb[2].mxu0 %v1385_v30 }
 0x387   :  { %3022 = vmatpush3.bf16.msra.mxu0 %v3793_v26  ;;  %2677 = vmatprep.mubr.msk.f32.mxu0 %vm3242_vm0, %v3243_v15 }
 0x388   :  { %3023 = vmatprep.subr.bf16.mxu0 %v3241_v1 }
 0x38b   :  { %3025 = vmatpush3.bf16.msra.mxu0 %v3816_v62 }
 0x38c   :  { %3026 = vmatprep.subr.bf16.mxu0 %v3241_v1 }
 0x38f   :  { %3028 = vmatpush3.bf16.msra.mxu0 %v3841_v2 }
 0x390   :  { %3029 = vmatprep.subr.bf16.mxu0 %v3241_v1 }
 0x393   :  { %3031 = vmatpush3.bf16.msra.mxu0 %v3866_v42 }
 0x394   :  { %3032 = vmatprep.subr.bf16.mxu0 %v3241_v1 }
 0x397   :  { %3034 = vmatpush3.bf16.msra.mxu0 %v3882_v18 }
 0x398   :  { %3035 = vmatprep.subr.bf16.mxu0 %v3241_v1 }
 0x39b   :  { %3037 = vmatpush3.bf16.msra.mxu0 %v3894_v11 }
 0x39c   :  { %3038 = vmatprep.subr.bf16.mxu0 %v3241_v1 }
 0x39f   :  { %3040 = vmatpush3.bf16.msra.mxu0 %v3901_v31 }
 0x3a0   :  { %3041 = vmatprep.subr.bf16.mxu0 %v3241_v1 }
 0x3a3   :  { %3043 = vmatpush3.bf16.msra.mxu0 %v3907_v27 }
 0x3a4   :  { %3044 = vmatprep.subr.bf16.mxu0 %v3241_v1 }
 0x3a6   :  { %2678 = vmatmul.mubr.f32.vlgmr.msra.gmra.mrb[2].mxu0 %v1386_v45 }
 0x3a7   :  { %3046 = vmatpush3.bf16.msra.mxu0 %v3045_v12  ;;  %2712 = vmatprep.mubr.msk.f32.mxu0 %vm3242_vm0, %v3243_v15 }
 0x3a8   :  { %3047 = vmatprep.subr.bf16.mxu0 %v3241_v1 }
 0x3ab   :  { %3049 = vmatpush3.bf16.msra.mxu0 %v3048_v32 }
 0x3ac   :  { %3050 = vmatprep.subr.bf16.mxu0 %v3241_v1 }
 0x3af   :  { %3052 = vmatpush3.bf16.msra.mxu0 %v3051_v39 }
 0x3b0   :  { %3053 = vmatprep.subr.bf16.mxu0 %v3241_v1 }
 0x3b3   :  { %3055 = vmatpush3.bf16.msra.mxu0 %v3054_v44 }
 0x3b4   :  { %3056 = vmatprep.subr.bf16.mxu0 %v3241_v1 }
 0x3b7   :  { %3058 = vmatpush3.bf16.msra.mxu0 %v3057_v55 }
 0x3b8   :  { %3059 = vmatprep.subr.bf16.mxu0 %v3241_v1 }
 0x3bb   :  { %3061 = vmatpush3.bf16.msra.mxu0 %v3060_v56 }
 0x3bc   :  { %3062 = vmatprep.subr.bf16.mxu0 %v3241_v1 }
 0x3bf   :  { %3064 = vmatpush3.bf16.msra.mxu0 %v3063_v63 }
 0x3c0   :  { %3065 = vmatprep.subr.bf16.mxu0 %v3241_v1 }
 0x3c3   :  { %3067 = vmatpush3.bf16.msra.mxu0 %v3066_v0 }
 0x3c4   :  { %3068 = vmatprep.subr.bf16.mxu0 %v3241_v1 }
 0x3c6   :  { %2713 = vmatmul.mubr.f32.vlgmr.msra.gmra.mrb[2].mxu0 %v3925_v7 }
 0x3c7   :  { %3070 = vmatpush3.bf16.msra.mxu0 %v3793_v26  ;;  %2747 = vmatprep.mubr.msk.f32.mxu0 %vm3242_vm0, %v3243_v15 }
 0x3c8   :  { %3071 = vmatprep.subr.bf16.mxu0 %v3241_v1 }
 0x3cb   :  { %3073 = vmatpush3.bf16.msra.mxu0 %v3816_v62 }
 0x3cc   :  { %3074 = vmatprep.subr.bf16.mxu0 %v3241_v1 }
 0x3cf   :  { %3076 = vmatpush3.bf16.msra.mxu0 %v3841_v2 }
 0x3d0   :  { %3077 = vmatprep.subr.bf16.mxu0 %v3241_v1 }
 0x3d3   :  { %3079 = vmatpush3.bf16.msra.mxu0 %v3866_v42 }
 0x3d4   :  { %3080 = vmatprep.subr.bf16.mxu0 %v3241_v1 }
 0x3d7   :  { %3082 = vmatpush3.bf16.msra.mxu0 %v3882_v18 }
 0x3d8   :  { %3083 = vmatprep.subr.bf16.mxu0 %v3241_v1 }
 0x3db   :  { %3085 = vmatpush3.bf16.msra.mxu0 %v3894_v11 }
 0x3dc   :  { %3086 = vmatprep.subr.bf16.mxu0 %v3241_v1 }
 0x3df   :  { %3088 = vmatpush3.bf16.msra.mxu0 %v3901_v31 }
 0x3e0   :  { %3089 = vmatprep.subr.bf16.mxu0 %v3241_v1 }
 0x3e3   :  { %3091 = vmatpush3.bf16.msra.mxu0 %v3907_v27 }
 0x3e6   :  { %2748 = vmatmul.mubr.f32.vlgmr.msra.gmra.mrb[2].mxu0 %v3925_v7 }
 0x441   :  { %v1390_v15 = vpop.f32.mrb[4].mxu1 }
 0x442   :  { %v2574_v19 = vpop.f32.mrb[5].mxu1  ;;  %v1391_v51 = vadd.f32 %v1974_v24, %v1390_v15 }
 0x4b9   :  { %v1940_v52 = vpop.f32.mrb[2].mxu0 }
 0x4ba   :  { %v3095_v46 = vadd.f32 %v1940_v52, %v1391_v51  ;;  %v2749_v47 = vpop.f32.mrb[3].mxu0 }
 0x4bc   :  { %v1975_v53 = vmul.f32 -1.442695, %v3095_v46 }
 0x4be   :  { %3137 = vpow2.f32 %v1975_v53 }
 0x4c8   :  { %v3138_v57 = vpop.eup %3137 }
 0x4c9   :  { %v1947_v13 = vadd.f32 1.0, %v3138_v57 }
 0x4cb   :  { %3139 = vrcp.f32 %v1947_v13 }
 0x4d5   :  { %v3140_v1 = vpop.eup %3139 }
 0x4d6   :  { %v1950_v14 = vmul.f32 %v3140_v1, %v3095_v46 }
 0x4d8   :  { %1951 = vst [vmem:[#allocation8] sm:$0xff] %v1950_v14 }
 0x4d9   :  { %3218 = shalt.err (!%p3215_p0)
}
 0x4da   :  { %s3219_s16 = scalar_lea.hbm %s4039_s6, 128 }
 0x4db   :  { %p3220_p1 = scmp.ne.s32.totalorder %s4039_s6, %s3219_s16  ;;  %p3223_p2 = scmp.lt.u32.totalorder %s3219_s16, %s4039_s6 }
 0x4dd   :  { %p3225_p3 = pnand %p3223_p2, %p3220_p1 }
 0x4df   :  { %3228 = shalt.err (!%p3225_p3)
}
 0x4e0   :  { %1961 = dma.vmem_to_hbm [thread:$0]  %s1959_s13, 128, %s4039_s6, [#allocation4]  }
 0x4e1   :  { %3233 = dma.done.wait [#allocation4], 128  }
 0x4e2   :  { %3234 = vsyncadd [#allocation4], 4294967168 }
 0x4e3   :  { %1965 = vsyncpa [#allocation3], 1 }
 0x4e4   :  { %1966 = vsyncpa [#allocation6], 1 }
 0x4e5   :  { %1967 = vsyncpa [#allocation4], 1 }

</bundles_post_ra>
